<compile_context>
chip_gen: v7x
topology: tpu7x:2x2x1
jax: 0.10.0
libtpu: 0.0.40
codegen_flags: <defaults>
</compile_context>

<pallas_src>
import jax
import jax.numpy as jnp
from jax import lax
from jax.experimental import pallas as pl
from jax.experimental.pallas import tpu as pltpu

INPUT_SIZE = 10
HIDDEN_SIZES = [64, 32]
NUM_CLASSES = 2
HPAD = 128  # lane-padded hidden width (full vreg lane width; right on all gens)


def _round_up(x, m):
    return ((x + m - 1) // m) * m


def _epilogue_dtype():
    """bf16 bias-add/ReLU only where the VPU has native bf16 (v6e / v7x)."""
    try:
        kind = jax.devices()[0].device_kind.lower()
    except Exception:
        return jnp.float32
    if "v6" in kind or "v7" in kind:
        return jnp.bfloat16
    return jnp.float32


def _make_kernel(sub):
    """Kernel over one (TB, INPUT_SIZE) block, sub-tiled in `sub`-row chunks."""

    def mlp_kernel(x_ref, w1_ref, b1_ref, w2_ref, b2_ref, w3_ref, b3_ref, o_ref):
        nsub = x_ref.shape[0] // sub  # static

        # Weights/biases are tiny and VMEM-resident; read once per grid step.
        w1 = w1_ref[...]
        b1 = b1_ref[...]
        w2 = w2_ref[...]
        b2 = b2_ref[...]
        w3 = w3_ref[...]
        b3 = b3_ref[...]

        def body(s, carry):
            r = pl.multiple_of(s * sub, sub)
            # In-kernel f32 -> bf16 cast of the streamed activations.
            xs = x_ref[pl.ds(r, sub), :].astype(jnp.bfloat16)          # (sub, 10)

            # Layer 1: Linear(10 -> 64, padded 128) + ReLU
            a1 = jnp.dot(xs, w1, preferred_element_type=jnp.float32)   # (sub, 128) f32
            h1 = jnp.maximum(a1.astype(b1.dtype) + b1, 0.0).astype(jnp.bfloat16)

            # Layer 2: Linear(64 -> 32, padded 128) + ReLU
            a2 = jnp.dot(h1, w2, preferred_element_type=jnp.float32)
            h2 = jnp.maximum(a2.astype(b2.dtype) + b2, 0.0).astype(jnp.bfloat16)

            # Layer 3: Linear(32 -> 2), logits (no activation), f32 epilogue.
            out = jnp.dot(h2, w3, preferred_element_type=jnp.float32) + b3
            o_ref[pl.ds(r, sub), :] = out.astype(o_ref.dtype)          # (sub, 2)
            return carry

        lax.fori_loop(0, nsub, body, 0, unroll=True)

    return mlp_kernel


def deep_mlp_forward(x, params, *, block_b=2048):
    """x: (B, INPUT_SIZE) f32.  params: (w1,b1,w2,b2,w3,b3), W as (in, out)."""
    w1, b1, w2, b2, w3, b3 = params
    B, F = x.shape
    assert F == INPUT_SIZE

    # Batch tile: large (amortize ~600-cycle per-step overhead) but capped at
    # ~ceil(B/2) so the grid keeps >= 2 steps for v7x's two TensorCores.
    TB = min(block_b, _round_up(max(pl.cdiv(B, 2), 1), 8))
    TB = max(TB, 8)
    if TB > 256:
        TB = _round_up(TB, 256)   # make the inner sub-tile divide evenly
        SUB = 256
    else:
        SUB = TB
    B_pad = _round_up(B, TB)
    if B_pad != B:
        x = jnp.pad(x, ((0, B_pad - B), (0, 0)))

    ep_dtype = _epilogue_dtype()

    # Lane-pad hidden dims to 128 with zeros; MXU operands in bf16.
    h1_w, h2_w = HIDDEN_SIZES
    w1p = jnp.pad(w1, ((0, 0), (0, HPAD - h1_w))).astype(jnp.bfloat16)           # (10, 128)
    b1p = jnp.pad(b1, ((0, 0), (0, HPAD - h1_w))).astype(ep_dtype)               # (1, 128)
    w2p = jnp.pad(w2, ((0, HPAD - h1_w), (0, HPAD - h2_w))).astype(jnp.bfloat16)  # (128, 128)
    b2p = jnp.pad(b2, ((0, 0), (0, HPAD - h2_w))).astype(ep_dtype)               # (1, 128)
    w3p = jnp.pad(w3, ((0, HPAD - h2_w), (0, 0))).astype(jnp.bfloat16)           # (128, 2)
    b3p = b3.astype(jnp.float32)                                                  # (1, 2)

    grid = (B_pad // TB,)

    # Weights/biases: constant index_map -> DMA'd once, VMEM-resident across steps.
    def const_spec(shape):
        return pl.BlockSpec(shape, lambda i: (0, 0))

    flops = 2 * B_pad * (INPUT_SIZE * HPAD + HPAD * HPAD + HPAD * NUM_CLASSES)
    bytes_accessed = (
        B_pad * INPUT_SIZE * 4                       # f32 activations in
        + B_pad * NUM_CLASSES * 4                    # f32 logits out
        + (w1p.size + w2p.size + w3p.size) * 2       # bf16 weights
        + (b1p.size + b2p.size) * jnp.dtype(ep_dtype).itemsize
        + b3p.size * 4
    )

    out_pad = pl.pallas_call(
        _make_kernel(SUB),
        out_shape=jax.ShapeDtypeStruct((B_pad, NUM_CLASSES), jnp.float32),
        grid=grid,
        in_specs=[
            pl.BlockSpec((TB, INPUT_SIZE), lambda i: (i, 0)),  # streamed x (f32)
            const_spec(w1p.shape), const_spec(b1p.shape),
            const_spec(w2p.shape), const_spec(b2p.shape),
            const_spec(w3p.shape), const_spec(b3p.shape),
        ],
        out_specs=pl.BlockSpec((TB, NUM_CLASSES), lambda i: (i, 0)),
        compiler_params=pltpu.CompilerParams(
            dimension_semantics=("parallel",),
        ),
        cost_estimate=pl.CostEstimate(
            flops=flops, transcendentals=0, bytes_accessed=bytes_accessed),
    )(x, w1p, b1p, w2p, b2p, w3p, b3p)

    return out_pad[:B]


def init_params(key):
    """Deterministic init mimicking nn.Linear (uniform +/- 1/sqrt(fan_in))."""
    sizes = [INPUT_SIZE] + HIDDEN_SIZES + [NUM_CLASSES]
    params = []
    for i in range(len(sizes) - 1):
        fan_in, fan_out = sizes[i], sizes[i + 1]
        key, kw, kb = jax.random.split(key, 3)
        bound = 1.0 / jnp.sqrt(jnp.float32(fan_in))
        # stored as (in, out) = transpose of PyTorch's (out, in)
        w = jax.random.uniform(kw, (fan_in, fan_out), jnp.float32, -bound, bound)
        b = jax.random.uniform(kb, (1, fan_out), jnp.float32, -bound, bound)
        params.extend([w, b])
    return tuple(params)


def reference_forward(x, params):
    w1, b1, w2, b2, w3, b3 = params
    h1 = jnp.maximum(x @ w1 + b1, 0.0)
    h2 = jnp.maximum(h1 @ w2 + b2, 0.0)
    return h2 @ w3 + b3


if __name__ == "__main__":
    key = jax.random.PRNGKey(0)
    kx, kp = jax.random.split(key)
    params = init_params(kp)

    # Small single-step sanity check.
    B = 8
    x = jax.random.normal(kx, (B, INPUT_SIZE), jnp.float32)
    out = jax.block_until_ready(deep_mlp_forward(x, params))
    ref = reference_forward(x, params)
    assert out.shape == (B, NUM_CLASSES)
    # bf16 matmul operands (and bf16 epilogue on v6e/v7x) -> loosened tolerance.
    assert jnp.allclose(out, ref, atol=5e-2, rtol=5e-2)

    # Multi-step grid + non-multiple batch padding path (TB forced small).
    B2 = 20
    x2 = jax.random.normal(kx, (B2, INPUT_SIZE), jnp.float32)
    out2 = jax.block_until_ready(deep_mlp_forward(x2, params, block_b=8))
    ref2 = reference_forward(x2, params)
    assert out2.shape == (B2, NUM_CLASSES)
    assert jnp.allclose(out2, ref2, atol=5e-2, rtol=5e-2)

    # Larger batch: exercises TB > 256, the unrolled sub-tile loop, >=2 grid steps.
    B3 = 700
    x3 = jax.random.normal(kx, (B3, INPUT_SIZE), jnp.float32)
    out3 = jax.block_until_ready(deep_mlp_forward(x3, params))
    ref3 = reference_forward(x3, params)
    assert out3.shape == (B3, NUM_CLASSES)
    assert jnp.allclose(out3, ref3, atol=5e-2, rtol=5e-2)

    print("KERNEL_OK")
</pallas_src>

<mosaic_0001>
module attributes {stable_mosaic.version = 11 : i64} {
  func.func @mlp_kernel(%arg0: i32, %arg1: memref<8x10xf32, #tpu.memory_space<vmem>>, %arg2: memref<10x128xbf16, #tpu.memory_space<vmem>>, %arg3: memref<1x128xf32, #tpu.memory_space<vmem>>, %arg4: memref<128x128xbf16, #tpu.memory_space<vmem>>, %arg5: memref<1x128xf32, #tpu.memory_space<vmem>>, %arg6: memref<128x2xbf16, #tpu.memory_space<vmem>>, %arg7: memref<1x2xf32, #tpu.memory_space<vmem>>, %arg8: memref<8x2xf32, #tpu.memory_space<vmem>>) attributes {dimension_semantics = [#tpu.dimension_semantics<parallel>], iteration_bounds = array<i64: 1>, scalar_prefetch = 0 : i64, scratch_operands = 0 : i64, tpu.core_type = #tpu.core_type<tc>, window_params = [{transform_indices = @transform_0, window_bounds = array<i64: 8, 10>}, {pipeline_mode = #tpu.pipeline_mode<synchronous>, transform_indices = @transform_1, window_bounds = array<i64: 10, 128>}, {pipeline_mode = #tpu.pipeline_mode<synchronous>, transform_indices = @transform_2, window_bounds = array<i64: 1, 128>}, {pipeline_mode = #tpu.pipeline_mode<synchronous>, transform_indices = @transform_3, window_bounds = array<i64: 128, 128>}, {pipeline_mode = #tpu.pipeline_mode<synchronous>, transform_indices = @transform_4, window_bounds = array<i64: 1, 128>}, {pipeline_mode = #tpu.pipeline_mode<synchronous>, transform_indices = @transform_5, window_bounds = array<i64: 128, 2>}, {pipeline_mode = #tpu.pipeline_mode<synchronous>, transform_indices = @transform_6, window_bounds = array<i64: 1, 2>}, {transform_indices = @transform_7, window_bounds = array<i64: 8, 2>}]} {
    %c0 = arith.constant 0 : index
    %c0_0 = arith.constant 0 : index
    %0 = vector.load %arg2[%c0, %c0_0] : memref<10x128xbf16, #tpu.memory_space<vmem>>, vector<10x128xbf16>
    %c0_1 = arith.constant 0 : index
    %c0_2 = arith.constant 0 : index
    %1 = vector.load %arg3[%c0_1, %c0_2] : memref<1x128xf32, #tpu.memory_space<vmem>>, vector<1x128xf32>
    %c0_3 = arith.constant 0 : index
    %c0_4 = arith.constant 0 : index
    %2 = vector.load %arg4[%c0_3, %c0_4] : memref<128x128xbf16, #tpu.memory_space<vmem>>, vector<128x128xbf16>
    %c0_5 = arith.constant 0 : index
    %c0_6 = arith.constant 0 : index
    %3 = vector.load %arg5[%c0_5, %c0_6] : memref<1x128xf32, #tpu.memory_space<vmem>>, vector<1x128xf32>
    %c0_7 = arith.constant 0 : index
    %c0_8 = arith.constant 0 : index
    %4 = vector.load %arg6[%c0_7, %c0_8] : memref<128x2xbf16, #tpu.memory_space<vmem>>, vector<128x2xbf16>
    %c0_9 = arith.constant 0 : index
    %c0_10 = arith.constant 0 : index
    %5 = vector.load %arg7[%c0_9, %c0_10] : memref<1x2xf32, #tpu.memory_space<vmem>>, vector<1x2xf32>
    %c0_i32 = arith.constant 0 : i32
    %c8_i32 = arith.constant 8 : i32
    %6 = arith.muli %c0_i32, %c8_i32 : i32
    %7 = tpu.assume_multiple %6, 8 : i32
    %8 = arith.index_cast %7 : i32 to index
    %c0_11 = arith.constant 0 : index
    %9 = vector.load %arg1[%8, %c0_11] : memref<8x10xf32, #tpu.memory_space<vmem>>, vector<8x10xf32>
    %10 = arith.truncf %9 : vector<8x10xf32> to vector<8x10xbf16>
    %cst = arith.constant dense<0.000000e+00> : vector<8x128xf32>
    %11 = tpu.matmul %10, %0, %cst {dimension_numbers = #tpu.dot_dimension_numbers<[1], [0], [0], [1], [0, 0, 1, 1], [], []>} : vector<8x10xbf16>, vector<10x128xbf16>, vector<8x128xf32> -> vector<8x128xf32>
    %12 = vector.broadcast %1 : vector<1x128xf32> to vector<8x128xf32>
    %13 = arith.addf %11, %12 : vector<8x128xf32>
    %cst_12 = arith.constant 0.000000e+00 : f32
    %14 = vector.broadcast %cst_12 : f32 to vector<8x128xf32>
    %15 = arith.maximumf %13, %14 : vector<8x128xf32>
    %16 = arith.truncf %15 : vector<8x128xf32> to vector<8x128xbf16>
    %cst_13 = arith.constant dense<0.000000e+00> : vector<8x128xf32>
    %17 = tpu.matmul %16, %2, %cst_13 {dimension_numbers = #tpu.dot_dimension_numbers<[1], [0], [0], [1], [0, 0, 1, 1], [], []>} : vector<8x128xbf16>, vector<128x128xbf16>, vector<8x128xf32> -> vector<8x128xf32>
    %18 = vector.broadcast %3 : vector<1x128xf32> to vector<8x128xf32>
    %19 = arith.addf %17, %18 : vector<8x128xf32>
    %cst_14 = arith.constant 0.000000e+00 : f32
    %20 = vector.broadcast %cst_14 : f32 to vector<8x128xf32>
    %21 = arith.maximumf %19, %20 : vector<8x128xf32>
    %22 = arith.truncf %21 : vector<8x128xf32> to vector<8x128xbf16>
    %cst_15 = arith.constant dense<0.000000e+00> : vector<8x2xf32>
    %23 = tpu.matmul %22, %4, %cst_15 {dimension_numbers = #tpu.dot_dimension_numbers<[1], [0], [0], [1], [0, 0, 1, 1], [], []>} : vector<8x128xbf16>, vector<128x2xbf16>, vector<8x2xf32> -> vector<8x2xf32>
    %24 = vector.broadcast %5 : vector<1x2xf32> to vector<8x2xf32>
    %25 = arith.addf %23, %24 : vector<8x2xf32>
    %26 = arith.index_cast %7 : i32 to index
    %c0_16 = arith.constant 0 : index
    %27 = vector.load %arg8[%26, %c0_16] : memref<8x2xf32, #tpu.memory_space<vmem>>, vector<8x2xf32>
    tpu.vector_store %arg8[%26, %c0_16], %25 {strides = array<i32>} : memref<8x2xf32, #tpu.memory_space<vmem>>, vector<8x2xf32>,
    %c1_i32 = arith.constant 1 : i32
    return
  }
  func.func @transform_0(%arg0: i32) -> (i32, i32) {
    %c0_i32 = arith.constant 0 : i32
    %c0_i32_0 = arith.constant 0 : i32
    return %arg0, %c0_i32 : i32, i32
  }
  func.func @transform_1(%arg0: i32) -> (i32, i32) {
    %c0_i32 = arith.constant 0 : i32
    %c0_i32_0 = arith.constant 0 : i32
    %c0_i32_1 = arith.constant 0 : i32
    return %c0_i32, %c0_i32_0 : i32, i32
  }
  func.func @transform_2(%arg0: i32) -> (i32, i32) {
    %c0_i32 = arith.constant 0 : i32
    %c0_i32_0 = arith.constant 0 : i32
    %c0_i32_1 = arith.constant 0 : i32
    return %c0_i32, %c0_i32_0 : i32, i32
  }
  func.func @transform_3(%arg0: i32) -> (i32, i32) {
    %c0_i32 = arith.constant 0 : i32
    %c0_i32_0 = arith.constant 0 : i32
    %c0_i32_1 = arith.constant 0 : i32
    return %c0_i32, %c0_i32_0 : i32, i32
  }
  func.func @transform_4(%arg0: i32) -> (i32, i32) {
    %c0_i32 = arith.constant 0 : i32
    %c0_i32_0 = arith.constant 0 : i32
    %c0_i32_1 = arith.constant 0 : i32
    return %c0_i32, %c0_i32_0 : i32, i32
  }
  func.func @transform_5(%arg0: i32) -> (i32, i32) {
    %c0_i32 = arith.constant 0 : i32
    %c0_i32_0 = arith.constant 0 : i32
    %c0_i32_1 = arith.constant 0 : i32
    return %c0_i32, %c0_i32_0 : i32, i32
  }
  func.func @transform_6(%arg0: i32) -> (i32, i32) {
    %c0_i32 = arith.constant 0 : i32
    %c0_i32_0 = arith.constant 0 : i32
    %c0_i32_1 = arith.constant 0 : i32
    return %c0_i32, %c0_i32_0 : i32, i32
  }
  func.func @transform_7(%arg0: i32) -> (i32, i32) {
    %c0_i32 = arith.constant 0 : i32
    %c0_i32_0 = arith.constant 0 : i32
    return %arg0, %c0_i32 : i32, i32
  }
}

</mosaic_0001>

<bundles_post_ra>
// kernel: tpu_custom_call.1
= control target key start
LH: loop header
LB: loop body
LE: loop exit
PB: predicated region body
PF: predicated region fallthrough
CT: control target
= control target key end

     0   :  { %12 = vsyncpa [#allocation3], 0  ;;  %s471_s24 = smov [#allocation2]   ;;  %s614_s0 = inlined_call_operand.vmem [shape: f32[8,10], index: 0, kind: input, shape index: {}]   ;;  %s615_s1 = inlined_call_operand.hbm [shape: bf16[10,128], index: 1, kind: input, shape index: {}]   ;;  %s616_s2 = inlined_call_operand.vmem [shape: f32[1,128], index: 2, kind: input, shape index: {}]   ;;  %s617_s3 = inlined_call_operand.vmem [shape: bf16[128,128], index: 3, kind: input, shape index: {}]   ;;  %s618_s4 = inlined_call_operand.vmem [shape: f32[1,128], index: 4, kind: input, shape index: {}]   ;;  %s619_s5 = inlined_call_operand.vmem [shape: bf16[128,2], index: 5, kind: input, shape index: {}]   ;;  %s620_s6 = inlined_call_operand.vmem [shape: f32[1,2], index: 6, kind: input, shape index: {}]   ;;  %s621_s7 = inlined_call_operand.vmem [shape: f32[8,2], index: 7, kind: output, shape index: {}]  }
   0x1   :  { %s20_s25 = sshll.u32 %s471_s24, 4  ;;  %s447_s28 = scalar_lea.hbm %s615_s1, 128  ;;  %s21_s25 = int_to_ptr.vmem [resolvable:$true] %s20_s25 }
   0x2   :  { %p448_p0 = scmp.ne.s32.totalorder %s615_s1, %s447_s28  ;;  %p451_p1 = scmp.lt.u32.totalorder %s447_s28, %s615_s1 }
   0x4   :  { %p453_p2 = pnand %p451_p1, %p448_p0 }
   0x6   :  { %456 = shalt.err (!%p453_p2)
}
   0x7   :  { %s457_s10 = scalar_lea.vmem %s21_s25, 128  ;;  %p462_p4 = scmp.lt.s32.totalorder %s21_s25, %s21_s25 }
   0x8   :  { %p458_p3 = scmp.ne.s32.totalorder %s21_s25, %s457_s10  ;;  %p463_p5 = scmp.lt.s32.totalorder %s457_s10, %s457_s10 }
   0xa   :  { %p464_p6 = por %p463_p5, %p462_p4 }
   0xc   :  { %p465_p7 = pnand %p464_p6, %p458_p3 }
   0xe   :  { %468 = shalt.err (!%p465_p7)
}
   0xf   :  { %s472_s11 = smov 64   ;;  %s473_s12 = smov 4  }
  0x10   :  { %26 = dma.hbm_to_vmem [thread:$0]  %s615_s1, 128, %s21_s25, [#allocation3], %s472_s11, %s472_s11, %s473_s12  }
  0x11   :  { %469 = dma.done.wait [#allocation3], 128  }
  0x12   :  { %470 = vsyncadd [#allocation3], 4294967168  ;;  %v474_v0 = vmov 0.0   ;;  %vm475_vm0 = vmmov 0   ;;  %vm95_vm1 = vcmask 1044480   ;;  %v78_v2 = vld [vmem:[%s614_s0] sm:$0xff] }
  0x13   :  { %379 = vmatprep.subr.bf16.mxu0 %v474_v0  ;;  %381 = vmatprep.mubr.msk.bf16.mxu0 %vm475_vm0, %v474_v0  ;;  %v430_v1 = vld [vmem:[#allocation2] sm:$0x1f]   ;;  %v79_v4 = vpack.c.bf16 %v78_v2, %v78_v2  ;;  %vm91_vm2 = vcmask 80896   ;;  %v432_v6 = vld [vmem:[%s617_s3 + $0x8] sm:$0xff]   ;;  %v433_v7 = vld [vmem:[%s617_s3 + $0x10] sm:$0xff]   ;;  %vm331_vm3 = vcmask 15360  }
  0x14   :  { %385 = vmatprep.subr.bf16.mxu1 %v474_v0  ;;  %401 = vmatprep.mubr.msk.bf16.mxu1 %vm475_vm0, %v474_v0  ;;  %v97_v3 = vsel %vm95_vm1, %v430_v1, 0  ;;  %v431_v5 = vld [vmem:[%s617_s3] sm:$0xff]   ;;  %v434_v8 = vld [vmem:[%s617_s3 + $0x18] sm:$0xff]   ;;  %v436_v10 = vld [vmem:[%s617_s3 + $0x28] sm:$0xff]  }
  0x15   :  { %380 = vmatpush3.bf16.msra.mxu0 %v97_v3  ;;  %386 = vmatpush3.bf16.msra.mxu1 %v431_v5  ;;  %v435_v9 = vld [vmem:[%s617_s3 + $0x20] sm:$0xff]   ;;  %v437_v11 = vld [vmem:[%s617_s3 + $0x30] sm:$0xff]   ;;  %v438_v12 = vld [vmem:[%s617_s3 + $0x38] sm:$0xff]  }
  0x16   :  { %405 = vmatprep.subr.bf16.mxu0 %v474_v0  ;;  %387 = vmatprep.subr.bf16.mxu1 %v474_v0  ;;  %v439_v13 = vld [vmem:[%s619_s5] sm:$0xff]   ;;  %v440_v14 = vld [vmem:[%s619_s5 + $0x8] sm:$0xff]   ;;  %v441_v15 = vld [vmem:[%s619_s5 + $0x10] sm:$0xff]  }
  0x17   :  { %v442_v16 = vld [vmem:[%s619_s5 + $0x18] sm:$0xff]   ;;  %v443_v17 = vld [vmem:[%s619_s5 + $0x20] sm:$0xff]   ;;  %v444_v18 = vld [vmem:[%s619_s5 + $0x28] sm:$0xff]  }
  0x18   :  { %382 = vmatmul.mubr.msk.bf16.vlgmr.msra.gmra.mrb[0].mxu0 %vm91_vm2, %v79_v4  ;;  %v338_v19 = vld [vmem:[%s616_s2] ss:$0 sm:$0xff]  ;;  %v445_v27 = vld [vmem:[%s619_s5 + $0x30] sm:$0xff]   ;;  %v446_v28 = vld [vmem:[%s619_s5 + $0x38] sm:$0xff]  }
  0x19   :  { %421 = vmatprep.mubr.msk.bf16.mxu0 %vm475_vm0, %v474_v0  ;;  %388 = vmatpush3.bf16.msra.mxu1 %v432_v6  ;;  %v341_v29 = vld [vmem:[%s618_s4] ss:$0 sm:$0xff] }
  0x1a   :  { %389 = vmatprep.subr.bf16.mxu1 %v474_v0  ;;  %406 = vmatpush3.bf16.msra.mxu0 %v439_v13  ;;  %v350_v37 = vld [vmem:[%s620_s6] ss:$0 sm:$0xff] }
  0x1b   :  { %407 = vmatprep.subr.bf16.mxu0 %v474_v0 }
  0x1d   :  { %390 = vmatpush3.bf16.msra.mxu1 %v433_v7 }
  0x1e   :  { %391 = vmatprep.subr.bf16.mxu1 %v474_v0  ;;  %408 = vmatpush3.bf16.msra.mxu0 %v440_v14 }
  0x1f   :  { %409 = vmatprep.subr.bf16.mxu0 %v474_v0 }
  0x21   :  { %392 = vmatpush3.bf16.msra.mxu1 %v434_v8 }
  0x22   :  { %393 = vmatprep.subr.bf16.mxu1 %v474_v0  ;;  %410 = vmatpush3.bf16.msra.mxu0 %v441_v15 }
  0x23   :  { %411 = vmatprep.subr.bf16.mxu0 %v474_v0 }
  0x25   :  { %394 = vmatpush3.bf16.msra.mxu1 %v435_v9 }
  0x26   :  { %395 = vmatprep.subr.bf16.mxu1 %v474_v0  ;;  %412 = vmatpush3.bf16.msra.mxu0 %v442_v16 }
  0x27   :  { %413 = vmatprep.subr.bf16.mxu0 %v474_v0 }
  0x29   :  { %396 = vmatpush3.bf16.msra.mxu1 %v436_v10 }
  0x2a   :  { %397 = vmatprep.subr.bf16.mxu1 %v474_v0  ;;  %414 = vmatpush3.bf16.msra.mxu0 %v443_v17 }
  0x2b   :  { %415 = vmatprep.subr.bf16.mxu0 %v474_v0 }
  0x2d   :  { %398 = vmatpush3.bf16.msra.mxu1 %v437_v11 }
  0x2e   :  { %399 = vmatprep.subr.bf16.mxu1 %v474_v0  ;;  %416 = vmatpush3.bf16.msra.mxu0 %v444_v18 }
  0x2f   :  { %417 = vmatprep.subr.bf16.mxu0 %v474_v0 }
  0x31   :  { %400 = vmatpush3.bf16.msra.mxu1 %v438_v12 }
  0x32   :  { %418 = vmatpush3.bf16.msra.mxu0 %v445_v27 }
  0x33   :  { %419 = vmatprep.subr.bf16.mxu0 %v474_v0 }
  0x36   :  { %420 = vmatpush3.bf16.msra.mxu0 %v446_v28 }
  0xeb   :  { %v133_v20 = vpop.f32.mrb[0].mxu0 }
  0xec   :  { %v134_v21 = vadd.f32 %v338_v19, %v133_v20  ;;  %v383_v22 = vpop.f32.mrb[1].mxu0 }
  0xed   :  { %v136_v23 = vpop.f32.mrb[2].mxu0 }
  0xee   :  { %v139_v24 = vmax.f32 %v134_v21, 0.0  ;;  %v384_v25 = vpop.f32.mrb[3].mxu0 }
  0xf0   :  { %v140_v26 = vpack.c.bf16 %v139_v24, %v139_v24 }
  0xf2   :  { %402 = vmatmul.mubr.bf16.vlgmr.msra.gmra.mrb[0].mxu1 %v140_v26 }
 0x1c5   :  { %v229_v30 = vpop.f32.mrb[0].mxu1 }
 0x1c6   :  { %v230_v31 = vadd.f32 %v341_v29, %v229_v30  ;;  %v403_v32 = vpop.f32.mrb[1].mxu1 }
 0x1c7   :  { %v232_v33 = vpop.f32.mrb[2].mxu1 }
 0x1c8   :  { %v235_v34 = vmax.f32 %v230_v31, 0.0  ;;  %v404_v35 = vpop.f32.mrb[3].mxu1 }
 0x1ca   :  { %v236_v36 = vpack.c.bf16 %v235_v34, %v235_v34 }
 0x1cc   :  { %422 = vmatmul.mubr.bf16.vlgmr.msra.gmra.mrb[4].mxu0 %v236_v36 }
 0x29f   :  { %v325_v38 = vpop.f32.mrb[4].mxu0 }
 0x2a0   :  { %v326_v39 = vadd.f32 %v350_v37, %v325_v38  ;;  %v423_v40 = vpop.f32.mrb[5].mxu0 }
 0x2a1   :  { %v328_v41 = vpop.f32.mrb[6].mxu0 }
 0x2a2   :  { %332 = vst.msk [vmem:[%s621_s7] sm:$0xff] %vm331_vm3, %v326_v39  ;;  %v424_v42 = vpop.f32.mrb[7].mxu0 }
 0x2a3   :  { %337 = vsyncpa [#allocation3], 1 }

</bundles_post_ra>
